<compile_context>
chip_gen: v6e
topology: v6e:2x2x1
jax: 0.10.0
libtpu: 0.0.40
codegen_flags: <defaults>
</compile_context>

<pallas_src>
import math

import jax
import jax.numpy as jnp
from jax.experimental import pallas as pl
from jax.experimental.pallas import tpu as pltpu


LANE = 128  # TPU lane width: projected feature dim is padded to a multiple.


# ---------------------------------------------------------------------------
# Fused AttentionHead kernel (one (Bb, T) batch block per grid step)
# ---------------------------------------------------------------------------

def _attention_head_kernel(q_ref, k_ref, v_ref,
                           wq_ref, bq_ref, wk_ref, bk_ref, wv_ref, bv_ref,
                           o_ref):
    Bb, T, Dm = q_ref.shape
    Dp = wq_ref.shape[1]

    def project(x_ref, w_ref, b_ref):
        # (Bb*T, Dm) @ (Dm, Dp): bf16 MXU operands, f32 accumulation.
        x = x_ref[...].reshape(Bb * T, Dm).astype(jnp.bfloat16)
        y = jnp.dot(x, w_ref[...], preferred_element_type=jnp.float32)
        return (y + b_ref[...]).reshape(Bb, T, Dp)

    # 1/sqrt(d_k) is already folded into wq/bq, so Q arrives pre-scaled.
    Q = project(q_ref, wq_ref, bq_ref)
    K = project(k_ref, wk_ref, bk_ref)
    V = project(v_ref, wv_ref, bv_ref)

    # scores = (Q*scale) @ K^T per batch element; contract the feature dim
    # directly (no materialized transpose).  Zero-padded feature lanes of Q/K
    # contribute nothing.
    s = jnp.einsum("bqd,bkd->bqk",
                   Q.astype(jnp.bfloat16), K.astype(jnp.bfloat16),
                   preferred_element_type=jnp.float32)          # (Bb, T, T) f32

    # Numerically stable softmax in f32; normalization deferred to the
    # (T, Dp) output tensor instead of the (T, T) score tensor.
    m = jnp.max(s, axis=-1, keepdims=True)
    e = jnp.exp(s - m)
    recip = pl.reciprocal(jnp.sum(e, axis=-1, keepdims=True), approx=True)

    out = jnp.einsum("bqk,bkd->bqd",
                     e.astype(jnp.bfloat16), V.astype(jnp.bfloat16),
                     preferred_element_type=jnp.float32)        # (Bb, T, Dp)
    o_ref[...] = (out * recip).astype(o_ref.dtype)
    # TODO(synk): for production sequence lengths the full (T, T) score block
    # must become a flash-style online-softmax loop over a KV grid axis
    # (critical on v7x's 64 MiB VMEM); unnecessary at these toy shapes.


def _batch_block(B, T):
    """Largest divisor of B keeping Bb*T rows near one MXU-friendly tile."""
    target = max(1, 256 // max(T, 1))
    bb = 1
    for d in range(1, B + 1):
        if B % d == 0 and d <= target:
            bb = d
    return bb


def attention_head_forward(params, queries, keys, values):
    """queries/keys/values: (B, T, d_model) f32 -> (B, T, d_feature) f32."""
    B, T, Dm = queries.shape
    Df = params["d_feature"]
    Dp = params["wq"].shape[1]          # lane-dense padded feature width
    Bb = _batch_block(B, T)

    batch_blk = lambda b: (b, 0, 0)     # per-step batch-row block
    const2d = lambda b: (0, 0)          # weights/biases resident across grid

    out = pl.pallas_call(
        _attention_head_kernel,
        out_shape=jax.ShapeDtypeStruct((B, T, Dp), jnp.float32),
        grid_spec=pl.GridSpec(
            grid=(B // Bb,),
            in_specs=[
                pl.BlockSpec((Bb, T, Dm), batch_blk),   # queries
                pl.BlockSpec((Bb, T, Dm), batch_blk),   # keys
                pl.BlockSpec((Bb, T, Dm), batch_blk),   # values
                pl.BlockSpec((Dm, Dp), const2d),        # W_q (pre-scaled, bf16)
                pl.BlockSpec((1, Dp), const2d),         # b_q (pre-scaled, f32)
                pl.BlockSpec((Dm, Dp), const2d),        # W_k (bf16)
                pl.BlockSpec((1, Dp), const2d),         # b_k
                pl.BlockSpec((Dm, Dp), const2d),        # W_v (bf16)
                pl.BlockSpec((1, Dp), const2d),         # b_v
            ],
            out_specs=pl.BlockSpec((Bb, T, Dp), batch_blk),
        ),
        # Default scoped VMEM is ample at these sizes; raise vmem_limit_bytes
        # here if block sizes grow (esp. 16 MiB default on v5e).
        compiler_params=pltpu.CompilerParams(
            dimension_semantics=("parallel",)),          # dual-TC on v7x
    )(queries, keys, values,
      params["wq"], params["bq"],
      params["wk"], params["bk"],
      params["wv"], params["bv"])

    # Drop the zero-padded feature lanes (kernel stores stay lane-dense).
    return out[..., :Df]


# ---------------------------------------------------------------------------
# Parameters (mirrors nn.Linear default init; weights stored transposed)
# ---------------------------------------------------------------------------

def init_params(key, d_model, d_feature):
    ks = jax.random.split(key, 6)
    bound = 1.0 / math.sqrt(d_model)

    def u(k, shape):
        return jax.random.uniform(k, shape, jnp.float32, -bound, bound)

    return {
        "wq": u(ks[0], (d_model, d_feature)), "bq": u(ks[1], (1, d_feature)),
        "wk": u(ks[2], (d_model, d_feature)), "bk": u(ks[3], (1, d_feature)),
        "wv": u(ks[4], (d_model, d_feature)), "bv": u(ks[5], (1, d_feature)),
    }


def prepare_params(raw, d_feature):
    """One-time constant folding for the kernel:
       * fold 1/sqrt(d_k) into W_q / b_q,
       * zero-pad the feature dim to a multiple of 128 (lane-dense stores),
       * store weights in bf16 (halves weight DMA; f32 accumulation in-kernel),
         keep biases in f32 (added after the f32-accumulated dot)."""
    scale = 1.0 / math.sqrt(d_feature)
    Dp = ((d_feature + LANE - 1) // LANE) * LANE
    pad = Dp - d_feature

    padw = lambda w: jnp.pad(w, ((0, 0), (0, pad)))
    padb = lambda b: jnp.pad(b, ((0, 0), (0, pad)))

    return {
        "d_feature": d_feature,
        "wq": padw(raw["wq"] * scale).astype(jnp.bfloat16),
        "bq": padb(raw["bq"] * scale),
        "wk": padw(raw["wk"]).astype(jnp.bfloat16),
        "bk": padb(raw["bk"]),
        "wv": padw(raw["wv"]).astype(jnp.bfloat16),
        "bv": padb(raw["bv"]),
    }


def _reference(raw, q, k, v):
    """Pure-JAX f32 reference of AttentionHead.forward (mask=None, no dropout)."""
    Q = q @ raw["wq"] + raw["bq"]
    K = k @ raw["wk"] + raw["bk"]
    V = v @ raw["wv"] + raw["bv"]
    s = jnp.einsum("bqf,bkf->bqk", Q, K) / math.sqrt(Q.shape[-1])
    p = jax.nn.softmax(s, axis=-1)
    return jnp.einsum("bqk,bkf->bqf", p, V)


# ---------------------------------------------------------------------------
# Main
# ---------------------------------------------------------------------------

if __name__ == "__main__":
    d_model, d_feature = 32, 32
    batch, seq_len = 2, 8

    key = jax.random.PRNGKey(0)
    kp, kq, kk, kv = jax.random.split(key, 4)

    raw = init_params(kp, d_model, d_feature)
    params = prepare_params(raw, d_feature)

    queries = jax.random.normal(kq, (batch, seq_len, d_model), dtype=jnp.float32)
    keys = jax.random.normal(kk, (batch, seq_len, d_model), dtype=jnp.float32)
    values = jax.random.normal(kv, (batch, seq_len, d_model), dtype=jnp.float32)

    out = attention_head_forward(params, queries, keys, values)
    jax.block_until_ready(out)
    assert out.shape == (batch, seq_len, d_feature)

    ref = _reference(raw, queries, keys, values)
    max_err = float(jnp.max(jnp.abs(out - ref)))
    # bf16 MXU operands (with f32 accumulation) + approx EUP reciprocal give a
    # small, expected deviation from the pure-f32 reference.
    assert jnp.allclose(out, ref, atol=3e-2, rtol=3e-2), f"max abs err {max_err}"

    print("KERNEL_OK")
</pallas_src>

<mosaic_0001>
module attributes {stable_mosaic.version = 11 : i64} {
  func.func @_attention_head_kernel(%arg0: i32, %arg1: memref<2x8x32xf32, #tpu.memory_space<vmem>>, %arg2: memref<2x8x32xf32, #tpu.memory_space<vmem>>, %arg3: memref<2x8x32xf32, #tpu.memory_space<vmem>>, %arg4: memref<32x128xbf16, #tpu.memory_space<vmem>>, %arg5: memref<1x128xf32, #tpu.memory_space<vmem>>, %arg6: memref<32x128xbf16, #tpu.memory_space<vmem>>, %arg7: memref<1x128xf32, #tpu.memory_space<vmem>>, %arg8: memref<32x128xbf16, #tpu.memory_space<vmem>>, %arg9: memref<1x128xf32, #tpu.memory_space<vmem>>, %arg10: memref<2x8x128xf32, #tpu.memory_space<vmem>>) attributes {dimension_semantics = [#tpu.dimension_semantics<parallel>], iteration_bounds = array<i64: 1>, scalar_prefetch = 0 : i64, scratch_operands = 0 : i64, tpu.core_type = #tpu.core_type<tc>, window_params = [{transform_indices = @transform_0, window_bounds = array<i64: 2, 8, 32>}, {transform_indices = @transform_1, window_bounds = array<i64: 2, 8, 32>}, {transform_indices = @transform_2, window_bounds = array<i64: 2, 8, 32>}, {pipeline_mode = #tpu.pipeline_mode<synchronous>, transform_indices = @transform_3, window_bounds = array<i64: 32, 128>}, {pipeline_mode = #tpu.pipeline_mode<synchronous>, transform_indices = @transform_4, window_bounds = array<i64: 1, 128>}, {pipeline_mode = #tpu.pipeline_mode<synchronous>, transform_indices = @transform_5, window_bounds = array<i64: 32, 128>}, {pipeline_mode = #tpu.pipeline_mode<synchronous>, transform_indices = @transform_6, window_bounds = array<i64: 1, 128>}, {pipeline_mode = #tpu.pipeline_mode<synchronous>, transform_indices = @transform_7, window_bounds = array<i64: 32, 128>}, {pipeline_mode = #tpu.pipeline_mode<synchronous>, transform_indices = @transform_8, window_bounds = array<i64: 1, 128>}, {transform_indices = @transform_9, window_bounds = array<i64: 2, 8, 128>}]} {
    %c0 = arith.constant 0 : index
    %c0_0 = arith.constant 0 : index
    %c0_1 = arith.constant 0 : index
    %0 = vector.load %arg1[%c0, %c0_0, %c0_1] : memref<2x8x32xf32, #tpu.memory_space<vmem>>, vector<2x8x32xf32>
    %1 = vector.shape_cast %0 : vector<2x8x32xf32> to vector<16x32xf32>
    %2 = arith.truncf %1 : vector<16x32xf32> to vector<16x32xbf16>
    %c0_2 = arith.constant 0 : index
    %c0_3 = arith.constant 0 : index
    %3 = vector.load %arg4[%c0_2, %c0_3] : memref<32x128xbf16, #tpu.memory_space<vmem>>, vector<32x128xbf16>
    %cst = arith.constant dense<0.000000e+00> : vector<16x128xf32>
    %4 = tpu.matmul %2, %3, %cst {dimension_numbers = #tpu.dot_dimension_numbers<[1], [0], [0], [1], [0, 0, 1, 1], [], []>} : vector<16x32xbf16>, vector<32x128xbf16>, vector<16x128xf32> -> vector<16x128xf32>
    %c0_4 = arith.constant 0 : index
    %c0_5 = arith.constant 0 : index
    %5 = vector.load %arg5[%c0_4, %c0_5] : memref<1x128xf32, #tpu.memory_space<vmem>>, vector<1x128xf32>
    %6 = vector.broadcast %5 : vector<1x128xf32> to vector<16x128xf32>
    %7 = arith.addf %4, %6 : vector<16x128xf32>
    %8 = vector.shape_cast %7 : vector<16x128xf32> to vector<2x8x128xf32>
    %c0_6 = arith.constant 0 : index
    %c0_7 = arith.constant 0 : index
    %c0_8 = arith.constant 0 : index
    %9 = vector.load %arg2[%c0_6, %c0_7, %c0_8] : memref<2x8x32xf32, #tpu.memory_space<vmem>>, vector<2x8x32xf32>
    %10 = vector.shape_cast %9 : vector<2x8x32xf32> to vector<16x32xf32>
    %11 = arith.truncf %10 : vector<16x32xf32> to vector<16x32xbf16>
    %c0_9 = arith.constant 0 : index
    %c0_10 = arith.constant 0 : index
    %12 = vector.load %arg6[%c0_9, %c0_10] : memref<32x128xbf16, #tpu.memory_space<vmem>>, vector<32x128xbf16>
    %cst_11 = arith.constant dense<0.000000e+00> : vector<16x128xf32>
    %13 = tpu.matmul %11, %12, %cst_11 {dimension_numbers = #tpu.dot_dimension_numbers<[1], [0], [0], [1], [0, 0, 1, 1], [], []>} : vector<16x32xbf16>, vector<32x128xbf16>, vector<16x128xf32> -> vector<16x128xf32>
    %c0_12 = arith.constant 0 : index
    %c0_13 = arith.constant 0 : index
    %14 = vector.load %arg7[%c0_12, %c0_13] : memref<1x128xf32, #tpu.memory_space<vmem>>, vector<1x128xf32>
    %15 = vector.broadcast %14 : vector<1x128xf32> to vector<16x128xf32>
    %16 = arith.addf %13, %15 : vector<16x128xf32>
    %17 = vector.shape_cast %16 : vector<16x128xf32> to vector<2x8x128xf32>
    %c0_14 = arith.constant 0 : index
    %c0_15 = arith.constant 0 : index
    %c0_16 = arith.constant 0 : index
    %18 = vector.load %arg3[%c0_14, %c0_15, %c0_16] : memref<2x8x32xf32, #tpu.memory_space<vmem>>, vector<2x8x32xf32>
    %19 = vector.shape_cast %18 : vector<2x8x32xf32> to vector<16x32xf32>
    %20 = arith.truncf %19 : vector<16x32xf32> to vector<16x32xbf16>
    %c0_17 = arith.constant 0 : index
    %c0_18 = arith.constant 0 : index
    %21 = vector.load %arg8[%c0_17, %c0_18] : memref<32x128xbf16, #tpu.memory_space<vmem>>, vector<32x128xbf16>
    %cst_19 = arith.constant dense<0.000000e+00> : vector<16x128xf32>
    %22 = tpu.matmul %20, %21, %cst_19 {dimension_numbers = #tpu.dot_dimension_numbers<[1], [0], [0], [1], [0, 0, 1, 1], [], []>} : vector<16x32xbf16>, vector<32x128xbf16>, vector<16x128xf32> -> vector<16x128xf32>
    %c0_20 = arith.constant 0 : index
    %c0_21 = arith.constant 0 : index
    %23 = vector.load %arg9[%c0_20, %c0_21] : memref<1x128xf32, #tpu.memory_space<vmem>>, vector<1x128xf32>
    %24 = vector.broadcast %23 : vector<1x128xf32> to vector<16x128xf32>
    %25 = arith.addf %22, %24 : vector<16x128xf32>
    %26 = vector.shape_cast %25 : vector<16x128xf32> to vector<2x8x128xf32>
    %27 = arith.truncf %8 : vector<2x8x128xf32> to vector<2x8x128xbf16>
    %28 = arith.truncf %17 : vector<2x8x128xf32> to vector<2x8x128xbf16>
    "tpu.trace_start"() <{level = 10 : i32, message = "bqd,bkd->bqk"}> : () -> ()
    %cst_22 = arith.constant dense<0.000000e+00> : vector<2x8x8xf32>
    %29 = tpu.matmul %27, %28, %cst_22 {dimension_numbers = #tpu.dot_dimension_numbers<[2], [2], [1], [1], [0, 0, 0, 1, 1, 1], [0], [0]>} : vector<2x8x128xbf16>, vector<2x8x128xbf16>, vector<2x8x8xf32> -> vector<2x8x8xf32>
    "tpu.trace_stop"() : () -> ()
    %cst_23 = arith.constant dense<0xFF800000> : vector<2x8xf32>
    %30 = vector.multi_reduction <maximumf>, %29, %cst_23 [2] : vector<2x8x8xf32> to vector<2x8xf32>
    %31 = vector.shape_cast %30 : vector<2x8xf32> to vector<2x8x1xf32>
    %32 = vector.broadcast %31 : vector<2x8x1xf32> to vector<2x8x8xf32>
    %33 = arith.subf %29, %32 : vector<2x8x8xf32>
    %34 = math.exp %33 : vector<2x8x8xf32>
    %cst_24 = arith.constant dense<0.000000e+00> : vector<2x8xf32>
    %35 = vector.multi_reduction <add>, %34, %cst_24 [2] : vector<2x8x8xf32> to vector<2x8xf32>
    %36 = vector.shape_cast %35 : vector<2x8xf32> to vector<2x8x1xf32>
    %37 = tpu.reciprocal %36 {approx = true} : vector<2x8x1xf32> -> vector<2x8x1xf32>
    %38 = arith.truncf %34 : vector<2x8x8xf32> to vector<2x8x8xbf16>
    %39 = arith.truncf %26 : vector<2x8x128xf32> to vector<2x8x128xbf16>
    "tpu.trace_start"() <{level = 10 : i32, message = "bqk,bkd->bqd"}> : () -> ()
    %cst_25 = arith.constant dense<0.000000e+00> : vector<2x8x128xf32>
    %40 = tpu.matmul %38, %39, %cst_25 {dimension_numbers = #tpu.dot_dimension_numbers<[2], [1], [1], [2], [0, 0, 0, 1, 1, 2], [0], [0]>} : vector<2x8x8xbf16>, vector<2x8x128xbf16>, vector<2x8x128xf32> -> vector<2x8x128xf32>
    "tpu.trace_stop"() : () -> ()
    %41 = vector.broadcast %37 : vector<2x8x1xf32> to vector<2x8x128xf32>
    %42 = arith.mulf %40, %41 : vector<2x8x128xf32>
    %c0_26 = arith.constant 0 : index
    %c0_27 = arith.constant 0 : index
    %c0_28 = arith.constant 0 : index
    %43 = vector.load %arg10[%c0_26, %c0_27, %c0_28] : memref<2x8x128xf32, #tpu.memory_space<vmem>>, vector<2x8x128xf32>
    tpu.vector_store %arg10[%c0_26, %c0_27, %c0_28], %42 {strides = array<i32>} : memref<2x8x128xf32, #tpu.memory_space<vmem>>, vector<2x8x128xf32>,
    return
  }
  func.func @transform_0(%arg0: i32) -> (i32, i32, i32) {
    %c0_i32 = arith.constant 0 : i32
    %c0_i32_0 = arith.constant 0 : i32
    %c0_i32_1 = arith.constant 0 : i32
    return %arg0, %c0_i32, %c0_i32_0 : i32, i32, i32
  }
  func.func @transform_1(%arg0: i32) -> (i32, i32, i32) {
    %c0_i32 = arith.constant 0 : i32
    %c0_i32_0 = arith.constant 0 : i32
    %c0_i32_1 = arith.constant 0 : i32
    return %arg0, %c0_i32, %c0_i32_0 : i32, i32, i32
  }
  func.func @transform_2(%arg0: i32) -> (i32, i32, i32) {
    %c0_i32 = arith.constant 0 : i32
    %c0_i32_0 = arith.constant 0 : i32
    %c0_i32_1 = arith.constant 0 : i32
    return %arg0, %c0_i32, %c0_i32_0 : i32, i32, i32
  }
  func.func @transform_3(%arg0: i32) -> (i32, i32) {
    %c0_i32 = arith.constant 0 : i32
    %c0_i32_0 = arith.constant 0 : i32
    %c0_i32_1 = arith.constant 0 : i32
    return %c0_i32, %c0_i32_0 : i32, i32
  }
  func.func @transform_4(%arg0: i32) -> (i32, i32) {
    %c0_i32 = arith.constant 0 : i32
    %c0_i32_0 = arith.constant 0 : i32
    %c0_i32_1 = arith.constant 0 : i32
    return %c0_i32, %c0_i32_0 : i32, i32
  }
  func.func @transform_5(%arg0: i32) -> (i32, i32) {
    %c0_i32 = arith.constant 0 : i32
    %c0_i32_0 = arith.constant 0 : i32
    %c0_i32_1 = arith.constant 0 : i32
    return %c0_i32, %c0_i32_0 : i32, i32
  }
  func.func @transform_6(%arg0: i32) -> (i32, i32) {
    %c0_i32 = arith.constant 0 : i32
    %c0_i32_0 = arith.constant 0 : i32
    %c0_i32_1 = arith.constant 0 : i32
    return %c0_i32, %c0_i32_0 : i32, i32
  }
  func.func @transform_7(%arg0: i32) -> (i32, i32) {
    %c0_i32 = arith.constant 0 : i32
    %c0_i32_0 = arith.constant 0 : i32
    %c0_i32_1 = arith.constant 0 : i32
    return %c0_i32, %c0_i32_0 : i32, i32
  }
  func.func @transform_8(%arg0: i32) -> (i32, i32) {
    %c0_i32 = arith.constant 0 : i32
    %c0_i32_0 = arith.constant 0 : i32
    %c0_i32_1 = arith.constant 0 : i32
    return %c0_i32, %c0_i32_0 : i32, i32
  }
  func.func @transform_9(%arg0: i32) -> (i32, i32, i32) {
    %c0_i32 = arith.constant 0 : i32
    %c0_i32_0 = arith.constant 0 : i32
    %c0_i32_1 = arith.constant 0 : i32
    return %arg0, %c0_i32, %c0_i32_0 : i32, i32, i32
  }
}

</mosaic_0001>

<bundles_post_ra>
// kernel: tpu_custom_call.1
= control target key start
LH: loop header
LB: loop body
LE: loop exit
PB: predicated region body
PF: predicated region fallthrough
CT: control target
= control target key end

     0   :  { %14 = vsyncpa [#allocation3], 0  ;;  %s956_s0 = inlined_call_operand.hbm [shape: f32[2,8,32], index: 0, kind: input, shape index: {}]   ;;  %s957_s1 = inlined_call_operand.hbm [shape: f32[2,8,32], index: 1, kind: input, shape index: {}]   ;;  %s958_s2 = inlined_call_operand.hbm [shape: f32[2,8,32], index: 2, kind: input, shape index: {}]   ;;  %s959_s3 = inlined_call_operand.hbm [shape: bf16[32,128], index: 3, kind: input, shape index: {}]   ;;  %s960_s4 = inlined_call_operand.vmem [shape: f32[1,128], index: 4, kind: input, shape index: {}]   ;;  %s961_s5 = inlined_call_operand.hbm [shape: bf16[32,128], index: 5, kind: input, shape index: {}]   ;;  %s962_s6 = inlined_call_operand.vmem [shape: f32[1,128], index: 6, kind: input, shape index: {}]   ;;  %s963_s7 = inlined_call_operand.hbm [shape: bf16[32,128], index: 7, kind: input, shape index: {}]   ;;  %s964_s8 = inlined_call_operand.vmem [shape: f32[1,128], index: 8, kind: input, shape index: {}]   ;;  %s965_s9 = inlined_call_operand.hbm [shape: f32[2,8,128], index: 9, kind: output, shape index: {}]  }
   0x1   :  { %15 = vsyncpa [#allocation6], 0 }
   0x2   :  { %16 = vsyncpa [#allocation9], 0 }
   0x3   :  { %17 = vsyncpa [#allocation12], 0 }
   0x4   :  { %18 = vsyncpa [#allocation4], 0  ;;  %s809_s30 = smov [#allocation5]   ;;  %s810_s11 = smov [#allocation8]  }
   0x5   :  { %s36_s10 = sshll.u32 %s809_s30, 4  ;;  %s60_s12 = sshll.u32 %s810_s11, 4  ;;  %s37_s10 = int_to_ptr.vmem [resolvable:$true] %s36_s10  ;;  %s61_s12 = int_to_ptr.vmem [resolvable:$true] %s60_s12 }
   0x6   :  { %s667_s13 = scalar_lea.vmem %s37_s10, 256  ;;  %p672_p1 = scmp.lt.s32.totalorder %s37_s10, %s37_s10 }
   0x7   :  { %p668_p0 = scmp.ne.s32.totalorder %s37_s10, %s667_s13  ;;  %p673_p2 = scmp.lt.s32.totalorder %s667_s13, %s667_s13 }
   0x9   :  { %p674_p3 = por %p673_p2, %p672_p1 }
   0xb   :  { %p675_p4 = pnand %p674_p3, %p668_p0 }
   0xd   :  { %678 = shalt.err (!%p675_p4)
}
   0xe   :  { %s811_s14 = smov 128   ;;  %s812_s15 = smov 8  }
   0xf   :  { %42 = dma.hbm_to_vmem [thread:$0]  %s957_s1, 256, %s37_s10, [#allocation6], %s811_s14, %s811_s14, %s812_s15  }
  0x10   :  { %s687_s18 = scalar_lea.vmem %s61_s12, 256  ;;  %p692_p6 = scmp.lt.s32.totalorder %s61_s12, %s61_s12 }
  0x11   :  { %p688_p5 = scmp.ne.s32.totalorder %s61_s12, %s687_s18  ;;  %p693_p7 = scmp.lt.s32.totalorder %s687_s18, %s687_s18 }
  0x13   :  { %p694_p8 = por %p693_p7, %p692_p6 }
  0x15   :  { %p695_p9 = pnand %p694_p8, %p688_p5 }
  0x17   :  { %698 = shalt.err (!%p695_p9)
}
  0x18   :  { %s813_s19 = smov 64   ;;  %s814_s20 = smov 4  }
  0x19   :  { %66 = dma.hbm_to_vmem [thread:$0]  %s959_s3, 256, %s61_s12, [#allocation9], %s813_s19, %s813_s19, %s814_s20  }
  0x1a   :  { %s815_s23 = smov [#allocation2]   ;;  %s816_s25 = smov [#allocation7]  }
  0x1b   :  { %s24_s24 = sshll.u32 %s815_s23, 4  ;;  %s48_s1 = sshll.u32 %s816_s25, 4  ;;  %s25_s24 = int_to_ptr.vmem [resolvable:$true] %s24_s24  ;;  %s49_s1 = int_to_ptr.vmem [resolvable:$true] %s48_s1 }
  0x1c   :  { %s707_s26 = scalar_lea.vmem %s25_s24, 256  ;;  %p712_p11 = scmp.lt.s32.totalorder %s25_s24, %s25_s24 }
  0x1d   :  { %p708_p10 = scmp.ne.s32.totalorder %s25_s24, %s707_s26  ;;  %p713_p12 = scmp.lt.s32.totalorder %s707_s26, %s707_s26 }
  0x1f   :  { %p714_p13 = por %p713_p12, %p712_p11 }
  0x21   :  { %p715_p0 = pnand %p714_p13, %p708_p10 }
  0x23   :  { %718 = shalt.err (!%p715_p0)
}
  0x24   :  { %30 = dma.hbm_to_vmem [thread:$0]  %s956_s0, 256, %s25_s24, [#allocation3], %s811_s14, %s811_s14, %s812_s15  }
  0x25   :  { %s727_s3 = scalar_lea.vmem %s49_s1, 256  ;;  %p732_p2 = scmp.lt.s32.totalorder %s49_s1, %s49_s1 }
  0x26   :  { %p728_p1 = scmp.ne.s32.totalorder %s49_s1, %s727_s3  ;;  %p733_p3 = scmp.lt.s32.totalorder %s727_s3, %s727_s3 }
  0x28   :  { %p734_p4 = por %p733_p3, %p732_p2 }
  0x2a   :  { %p735_p5 = pnand %p734_p4, %p728_p1 }
  0x2c   :  { %738 = shalt.err (!%p735_p5)
}
  0x2d   :  { %54 = dma.hbm_to_vmem [thread:$0]  %s958_s2, 256, %s49_s1, [#allocation6], %s811_s14, %s811_s14, %s812_s15  }
  0x2e   :  { %s817_s10 = smov [#allocation10]   ;;  %s818_s12 = smov [#allocation11]  }
  0x2f   :  { %s74_s11 = sshll.u32 %s817_s10, 4  ;;  %s88_s13 = sshll.u32 %s818_s12, 4  ;;  %s75_s11 = int_to_ptr.vmem [resolvable:$true] %s74_s11  ;;  %s89_s13 = int_to_ptr.vmem [resolvable:$true] %s88_s13 }
  0x30   :  { %s747_s0 = scalar_lea.vmem %s75_s11, 256  ;;  %p752_p7 = scmp.lt.s32.totalorder %s75_s11, %s75_s11 }
  0x31   :  { %p748_p6 = scmp.ne.s32.totalorder %s75_s11, %s747_s0  ;;  %p753_p8 = scmp.lt.s32.totalorder %s747_s0, %s747_s0 }
  0x33   :  { %p754_p9 = por %p753_p8, %p752_p7 }
  0x35   :  { %p755_p10 = pnand %p754_p9, %p748_p6 }
  0x37   :  { %758 = shalt.err (!%p755_p10)
}
  0x38   :  { %80 = dma.hbm_to_vmem [thread:$0]  %s961_s5, 256, %s75_s11, [#allocation9], %s813_s19, %s813_s19, %s814_s20  }
  0x39   :  { %s767_s2 = scalar_lea.vmem %s89_s13, 256  ;;  %p772_p12 = scmp.lt.s32.totalorder %s89_s13, %s89_s13 }
  0x3a   :  { %p768_p11 = scmp.ne.s32.totalorder %s89_s13, %s767_s2  ;;  %p773_p13 = scmp.lt.s32.totalorder %s767_s2, %s767_s2 }
  0x3c   :  { %p774_p0 = por %p773_p13, %p772_p12 }
  0x3e   :  { %p775_p1 = pnand %p774_p0, %p768_p11 }
  0x40   :  { %778 = shalt.err (!%p775_p1)
}
  0x41   :  { %94 = dma.hbm_to_vmem [thread:$0]  %s963_s7, 256, %s89_s13, [#allocation12], %s813_s19, %s813_s19, %s814_s20  }
  0x42   :  { %799 = dma.done.wait [#allocation3], 256  }
  0x43   :  { %800 = vsyncadd [#allocation3], 4294967040 }
  0x44   :  { %801 = dma.done.wait [#allocation6], 512  }
  0x45   :  { %802 = vsyncadd [#allocation6], 4294966784 }
  0x46   :  { %803 = dma.done.wait [#allocation9], 512  }
  0x47   :  { %804 = vsyncadd [#allocation9], 4294966784 }
  0x48   :  { %805 = dma.done.wait [#allocation12], 256  }
  0x49   :  { %806 = vsyncadd [#allocation12], 4294967040  ;;  %v819_v0 = vmov 0.0   ;;  %vm820_vm0 = vmmov 0   ;;  %v645_v1 = vld [vmem:[#allocation10 + $0x8] sm:$0xff]   ;;  %v646_v2 = vld [vmem:[#allocation8 + $0x8] sm:$0xff]  }
  0x4a   :  { %592 = vmatprep.subr.bf16.mxu1 %v819_v0  ;;  %584 = vmatprep.subr.bf16.mxu0 %v819_v0  ;;  %v647_v3 = vld [vmem:[#allocation10] sm:$0xff]   ;;  %v648_v4 = vld [vmem:[#allocation8] sm:$0xff]   ;;  %v188_v6 = vld [vmem:[#allocation5 + $0x8] sm:$0xff]  ;;  %vm142_vm1 = vcmask 261120   ;;  %vm439_vm2 = vcmask 1043456   ;;  %vm411_vm3 = vcmask 64512  }
  0x4b   :  { %596 = vmatprep.mubr.msk.bf16.mxu1 %vm820_vm0, %v819_v0  ;;  %588 = vmatprep.mubr.msk.bf16.mxu0 %vm820_vm0, %v819_v0  ;;  %v187_v5 = vld [vmem:[#allocation5] sm:$0xff]  ;;  %v116_v7 = vld [vmem:[#allocation2] sm:$0xff]  ;;  %v117_v9 = vld [vmem:[#allocation2 + $0x8] sm:$0xff] }
  0x4c   :  { %593 = vmatpush3.bf16.msra.mxu1 %v645_v1  ;;  %585 = vmatpush3.bf16.msra.mxu0 %v646_v2  ;;  %v189_v8 = vpack.c.bf16 %v188_v6, %v187_v5  ;;  %v118_v10 = vpack.c.bf16 %v117_v9, %v116_v7  ;;  %v649_v11 = vld [vmem:[#allocation11 + $0x8] sm:$0xff]   ;;  %v650_v12 = vld [vmem:[#allocation11] sm:$0xff]   ;;  %v257_v13 = vld [vmem:[#allocation7] sm:$0xff] }
  0x4d   :  { %594 = vmatprep.subr.bf16.mxu1 %v819_v0  ;;  %586 = vmatprep.subr.bf16.mxu0 %v819_v0  ;;  %v258_v14 = vld [vmem:[#allocation7 + $0x8] sm:$0xff]  ;;  %v557_v16 = vld [vmem:[%s962_s6] ss:$0 sm:$0xff] }
  0x4e   :  { %v259_v15 = vpack.c.bf16 %v258_v14, %v257_v13  ;;  %v553_v19 = vld [vmem:[%s960_s4] ss:$0 sm:$0xff] }
  0x4f   :  { %v561_v34 = vld [vmem:[%s964_s8] ss:$0 sm:$0xff]  ;;  %s821_s8 = smov [#allocation13]  }
  0x50   :  { %595 = vmatpush3.bf16.msra.mxu1 %v647_v3  ;;  %587 = vmatpush3.bf16.msra.mxu0 %v648_v4  ;;  %s538_s22 = sshll.u32 %s821_s8, 4  ;;  %s539_s22 = int_to_ptr.vmem [resolvable:$true] %s538_s22 }
  0x51   :  { %608 = vmatprep.subr.bf16.mxu1 %v819_v0  ;;  %600 = vmatprep.subr.bf16.mxu0 %v819_v0  ;;  %s779_s23 = scalar_lea.vmem %s539_s22, 256  ;;  %p784_p3 = scmp.lt.s32.totalorder %s539_s22, %s539_s22 }
  0x52   :  { %p780_p2 = scmp.ne.s32.totalorder %s539_s22, %s779_s23  ;;  %p785_p4 = scmp.lt.s32.totalorder %s779_s23, %s779_s23 }
  0x53   :  { %597 = vmatmul.mubr.msk.bf16.vlgmr.msra.gmra.mxu1 %vm142_vm1, %v189_v8  ;;  %589 = vmatmul.mubr.msk.bf16.vlgmr.msra.gmra.mxu0 %vm142_vm1, %v118_v10 }
  0x54   :  { %610 = vmatprep.mubr.msk.bf16.mxu1 %vm820_vm0, %v819_v0  ;;  %601 = vmatpush3.bf16.msra.mxu0 %v649_v11  ;;  %p786_p5 = por %p785_p4, %p784_p3 }
  0x55   :  { %604 = vmatprep.mubr.msk.bf16.mxu0 %vm820_vm0, %v819_v0  ;;  %602 = vmatprep.subr.bf16.mxu0 %v819_v0 }
  0x56   :  { %p787_p6 = pnand %p786_p5, %p780_p2 }
  0x58   :  { %603 = vmatpush3.bf16.msra.mxu0 %v650_v12 }
  0x59   :  { %614 = vmatprep.subr.bf16.mxu0 %v819_v0 }
  0x5b   :  { %605 = vmatmul.mubr.msk.bf16.vlgmr.msra.gmra.mxu0 %vm142_vm1, %v259_v15 }
  0x5c   :  { %616 = vmatprep.mubr.msk.bf16.mxu0 %vm820_vm0, %v819_v0 }
 0x113   :  { %v250_v17 = vpop.f32.mrf.mxu1  ;;  %v180_v20 = vpop.f32.mrf.mxu0 }
 0x114   :  { %v251_v18 = vadd.f32 %v557_v16, %v250_v17  ;;  %v181_v24 = vadd.f32 %v553_v19, %v180_v20 }
 0x115   :  { %v598_v21 = vpop.f32.mrf.mxu1  ;;  %v590_v23 = vpop.f32.mrf.mxu0 }
 0x116   :  { %v329_v22 = vpack.c.bf16 %v251_v18, %v251_v18  ;;  %v327_v31 = vpack.c.bf16 %v181_v24, %v181_v24 }
 0x117   :  { %v253_v25 = vpop.f32.mrf.mxu1  ;;  %v183_v27 = vpop.f32.mrf.mxu0 }
 0x118   :  { %v254_v26 = vadd.f32 %v557_v16, %v253_v25  ;;  %609 = vmatpush3.bf16.xpose.msra.mxu1 %v329_v22  ;;  %v184_v32 = vadd.f32 %v553_v19, %v183_v27 }
 0x119   :  { %v599_v28 = vpop.f32.mrf.mxu1  ;;  %620 = vmatprep.subr.bf16.mxu1 %v819_v0  ;;  %v591_v30 = vpop.f32.mrf.mxu0 }
 0x11a   :  { %v330_v29 = vpack.c.bf16 %v254_v26, %v254_v26  ;;  %v328_v33 = vpack.c.bf16 %v184_v32, %v184_v32 }
 0x11b   :  { %v320_v35 = vpop.f32.mrf.mxu0 }
 0x11c   :  { %615 = vmatpush3.bf16.xpose.msra.mxu0 %v330_v29  ;;  %v321_v36 = vadd.f32 %v561_v34, %v320_v35 }
 0x11d   :  { %626 = vmatprep.subr.bf16.mxu0 %v819_v0  ;;  %v606_v37 = vpop.f32.mrf.mxu0 }
 0x11e   :  { %v434_v38 = vpack.c.bf16 %v321_v36, %v321_v36 }
 0x11f   :  { %611 = vmatmul.mubr.bf16.vlgmr.msra.gmra.mxu1 %v327_v31  ;;  %v323_v39 = vpop.f32.mrf.mxu0 }
 0x120   :  { %622 = vmatprep.mubr.msk.bf16.mxu1 %vm820_vm0, %v819_v0  ;;  %v441_v40 = vsel %vm439_vm2, %v434_v38, 0  ;;  %v324_v41 = vadd.f32 %v561_v34, %v323_v39 }
 0x121   :  { %v607_v42 = vpop.f32.mrf.mxu0  ;;  %621 = vmatpush3.bf16.msra.mxu1 %v441_v40 }
 0x122   :  { %v435_v43 = vpack.c.bf16 %v324_v41, %v324_v41 }
 0x123   :  { %617 = vmatmul.mubr.bf16.vlgmr.msra.gmra.mxu0 %v328_v33 }
 0x124   :  { %628 = vmatprep.mubr.msk.bf16.mxu0 %vm820_vm0, %v819_v0  ;;  %v487_v44 = vsel %vm439_vm2, %v435_v43, 0 }
 0x125   :  { %627 = vmatpush3.bf16.msra.mxu0 %v487_v44 }
 0x1df   :  { %v365_v45 = vpop.f32.mrf.mxu1 }
 0x1e0   :  { %v412_v46 = vsel %vm411_vm3, %v365_v45, -inf }
 0x1e1   :  { %413 = vmax.xlane.f32.xlu0 %v412_v46  ;;  %v612_v47 = vpop.f32.mrf.mxu1 }
 0x1e3   :  { %v368_v48 = vpop.f32.mrf.mxu1  ;;  %v405_v49 = vpop.f32.mrf.mxu0 }
 0x1e4   :  { %v415_v50 = vsel %vm411_vm3, %v405_v49, -inf }
 0x1e5   :  { %v613_v51 = vpop.f32.mrf.mxu1  ;;  %416 = vmax.xlane.f32.xlu0 %v415_v50  ;;  %v618_v52 = vpop.f32.mrf.mxu0 }
 0x1e7   :  { %v408_v53 = vpop.f32.mrf.mxu0 }
 0x1e9   :  { %v619_v54 = vpop.f32.mrf.mxu0 }
 0x26a   :  { %v414_v55 = vpop.xlane.xlu0 %413 }
 0x26b   :  { %v418_v56 = vsub.f32 %v365_v45, %v414_v55 }
 0x26d   :  { %v420_v57 = vmul.f32 1.442695, %v418_v56 }
 0x26e   :  { %v417_v58 = vpop.xlane.xlu0 %416 }
 0x26f   :  { %651 = vpow2.f32 %v420_v57  ;;  %v419_v59 = vsub.f32 %v405_v49, %v417_v58 }
 0x271   :  { %v422_v60 = vmul.f32 1.442695, %v419_v59 }
 0x273   :  { %653 = vpow2.f32 %v422_v60 }
 0x27c   :  { %v652_v61 = vpop.eup %651 }
 0x27d   :  { %v424_v62 = vsel %vm411_vm3, %v652_v61, 0.0  ;;  %v432_v63 = vpack.c.bf16 %v652_v61, %v652_v61 }
 0x27e   :  { %425 = vadd.xlane.f32.xlu1 %v424_v62 }
 0x27f   :  { %623 = vmatmul.mubr.msk.bf16.vlgmr.msra.gmra.mxu1 %vm411_vm3, %v432_v63 }
 0x280   :  { %v654_v0 = vpop.eup %653 }
 0x281   :  { %v427_v1 = vsel %vm411_vm3, %v654_v0, 0.0  ;;  %v433_v2 = vpack.c.bf16 %v654_v0, %v654_v0 }
 0x282   :  { %428 = vadd.xlane.f32.xlu1 %v427_v1 }
 0x283   :  { %629 = vmatmul.mubr.msk.bf16.vlgmr.msra.gmra.mxu0 %vm411_vm3, %v433_v2 }
 0x307   :  { %v426_v3 = vpop.xlane.xlu1 %425 }
 0x308   :  { %655 = vrcp.f32 %v426_v3 }
 0x30b   :  { %v429_v4 = vpop.xlane.xlu1 %428 }
 0x30c   :  { %657 = vrcp.f32 %v429_v4 }
 0x315   :  { %v656_v5 = vpop.eup %655 }
 0x319   :  { %v658_v9 = vpop.eup %657 }
 0x33f   :  { %v477_v6 = vpop.f32.mrf.mxu1 }
 0x340   :  { %v529_v7 = vmul.f32 %v656_v5, %v477_v6 }
 0x341   :  { %v624_v8 = vpop.f32.mrf.mxu1 }
 0x342   :  { %531 = vst [vmem:[#allocation13] sm:$0xff] %v529_v7 }
 0x343   :  { %v480_v10 = vpop.f32.mrf.mxu1  ;;  %v523_v11 = vpop.f32.mrf.mxu0 }
 0x344   :  { %v530_v12 = vmul.f32 %v658_v9, %v523_v11 }
 0x345   :  { %v625_v13 = vpop.f32.mrf.mxu1  ;;  %v630_v14 = vpop.f32.mrf.mxu0 }
 0x346   :  { %532 = vst [vmem:[#allocation13 + $0x8] sm:$0xff] %v530_v12 }
 0x347   :  { %v526_v15 = vpop.f32.mrf.mxu0 }
 0x348   :  { %790 = shalt.err (!%p787_p6)
}
 0x349   :  { %544 = dma.vmem_to_hbm [thread:$0]  %s539_s22, 256, %s965_s9, [#allocation4], %s811_s14, %s811_s14, %s812_s15   ;;  %v631_v16 = vpop.f32.mrf.mxu0 }
 0x34a   :  { %807 = dma.done.wait [#allocation4], 256  }
 0x34b   :  { %808 = vsyncadd [#allocation4], 4294967040 }
 0x34c   :  { %548 = vsyncpa [#allocation3], 1 }
 0x34d   :  { %549 = vsyncpa [#allocation6], 1 }
 0x34e   :  { %550 = vsyncpa [#allocation9], 1 }
 0x34f   :  { %551 = vsyncpa [#allocation12], 1 }
 0x350   :  { %552 = vsyncpa [#allocation4], 1 }

</bundles_post_ra>
